<compile_context>
chip_gen: v6e
topology: v6e:2x2x1
jax: 0.10.0
libtpu: 0.0.40
codegen_flags: <defaults>
</compile_context>

<pallas_src>
import functools

import jax
import jax.numpy as jnp
from jax.experimental import pallas as pl
from jax.experimental.pallas import tpu as pltpu

FEAT = 150        # embedding / layer1 input features (from the module)
LANES = 128       # folded-table rows padded to one full lane group
TB_MAX = 8        # max batch elements per grid step


def fused_nn_kernel(ids_ref,      # scalar prefetch: (B_pad, S) int32 in SMEM
                    wpool_ref,    # (TB, TB*S) f32 VMEM  = kron(I_TB, w3)
                    table_ref,    # (V_pad, LANES) f32 VMEM folded logit table
                    bias_ref,     # (1, 2) f32 VMEM fused bias
                    out_ref,      # (TB, 1, 2) f32 VMEM output block
                    rows_buf,     # scratch VMEM (TB*S, LANES) f32
                    *, tb, seq_len, vocab):
    base = pl.program_id(0) * tb

    # Gather the TB*S folded rows for this batch block from the VMEM-resident
    # table (dynamic sublane-indexed loads; ids are SMEM scalars).  Statically
    # unrolled: TB*S is small at these shapes.
    for b in range(tb):
        for s in range(seq_len):
            tok = ids_ref[base + b, s]
            # torch.nn.Embedding would raise on out-of-range ids; we clamp.
            tok = jnp.clip(tok, 0, vocab - 1)
            rows_buf[pl.ds(b * seq_len + s, 1), :] = table_ref[pl.ds(tok, 1), :]

    # w3-weighted sequence pooling for all TB batch elements in ONE MXU call:
    #   pooled[b, :] = sum_s w3[s] * rows[b*S + s, :]
    pooled = jnp.dot(wpool_ref[...], rows_buf[...],
                     preferred_element_type=jnp.float32)          # (TB, LANES)

    logits = pooled[:, 0:2] + bias_ref[...]                       # (TB, 2)

    # Softmax over the 2 classes (torch softmax(dim=1) on (B, 2, 1)).
    m = jnp.max(logits, axis=-1, keepdims=True)
    e = jnp.exp(logits - m)
    probs = e / jnp.sum(e, axis=-1, keepdims=True)
    out_ref[...] = probs.reshape(tb, 1, 2)


def _prepare_fused_params(params):
    """Fold Embedding -> Linear(150,40) -> Linear(40,2) into one f32 table."""
    emb, w1, b1, w2, b2, w3, b3 = params
    V, _ = emb.shape
    S = w3.shape[1]

    w12 = w2 @ w1                                       # (2, 150)
    folded = (emb @ w12.T).astype(jnp.float32)          # (V, 2) logit table
    b12 = b1 @ w2.T + b2                                # (1, 2)
    fused_bias = (jnp.sum(w3) * b12 + b3).astype(jnp.float32)     # (1, 2)

    v_pad = ((V + 7) // 8) * 8
    table = jnp.zeros((v_pad, LANES), jnp.float32).at[:V, :2].set(folded)
    w3_row = w3.astype(jnp.float32).reshape(1, S)
    return table, fused_bias, w3_row, V


def neural_network_forward(x_ids, params):
    """x_ids: (B, S) int32 token ids. Returns (B, 2, 1) float32 (as PyTorch)."""
    B, S = x_ids.shape
    table, fused_bias, w3_row, vocab = _prepare_fused_params(params)
    v_pad = table.shape[0]

    # Batch blocking: TB elements per step; keep >= 2 grid steps so the
    # "parallel" batch axis can be split across v7x's two TensorCores.
    if B == 1:
        tb, n_steps = 1, 1
    else:
        n_steps = max(2, (B + TB_MAX - 1) // TB_MAX)
        tb = (B + n_steps - 1) // n_steps
        n_steps = (B + tb - 1) // tb
    b_pad = tb * n_steps

    ids = x_ids.astype(jnp.int32)
    if b_pad != B:
        ids = jnp.concatenate(
            [ids, jnp.zeros((b_pad - B, S), jnp.int32)], axis=0)

    # Block-diagonal pooling weights: pooled = kron(I_TB, w3) @ gathered_rows.
    wpool = jnp.kron(jnp.eye(tb, dtype=jnp.float32), w3_row)      # (TB, TB*S)

    kernel = functools.partial(fused_nn_kernel, tb=tb, seq_len=S, vocab=vocab)

    grid_spec = pltpu.PrefetchScalarGridSpec(
        num_scalar_prefetch=1,                                    # ids -> SMEM
        grid=(n_steps,),
        in_specs=[
            pl.BlockSpec((tb, tb * S), lambda i, _ids: (0, 0)),   # pooling W
            pl.BlockSpec((v_pad, LANES), lambda i, _ids: (0, 0)), # folded table
            pl.BlockSpec((1, 2), lambda i, _ids: (0, 0)),         # fused bias
        ],
        out_specs=pl.BlockSpec((tb, 1, 2), lambda i, _ids: (i, 0, 0)),
        scratch_shapes=[pltpu.VMEM((tb * S, LANES), jnp.float32)],
    )

    out = pl.pallas_call(
        kernel,
        out_shape=jax.ShapeDtypeStruct((b_pad, 1, 2), jnp.float32),
        grid_spec=grid_spec,
        compiler_params=pltpu.CompilerParams(
            dimension_semantics=("parallel",),   # batch across TCs on v7x
            vmem_limit_bytes=32 * 1024 * 1024,
        ),
    )(ids, wpool, table, fused_bias)

    # (B_pad, 1, 2) -> (B, 2, 1) to match torch's softmax(dim=1) layout.
    return out.reshape(b_pad, 2)[:B][:, :, None]


def init_params(key, vocab_size, max_seq):
    """PyTorch-layout parameters (Linear weights are (out_features, in_features))."""
    ks = jax.random.split(key, 7)
    emb = jax.random.normal(ks[0], (vocab_size, FEAT), jnp.float32) * 0.1
    w1 = jax.random.normal(ks[1], (40, FEAT), jnp.float32) * 0.1
    b1 = jax.random.normal(ks[2], (1, 40), jnp.float32) * 0.1
    w2 = jax.random.normal(ks[3], (2, 40), jnp.float32) * 0.1
    b2 = jax.random.normal(ks[4], (1, 2), jnp.float32) * 0.1
    w3 = jax.random.normal(ks[5], (1, max_seq), jnp.float32) * 0.1  # Linear(maxSeq, 1)
    b3 = jax.random.normal(ks[6], (1, 1), jnp.float32) * 0.1
    return emb, w1, b1, w2, b2, w3, b3


def reference_forward(x_ids, params):
    """Pure-JAX f32 reference mirroring the PyTorch forward exactly."""
    emb, w1, b1, w2, b2, w3, b3 = params
    o = emb[x_ids]                           # (B, S, 150)
    o = o @ w1.T + b1[0]                     # (B, S, 40)
    o = o @ w2.T + b2[0]                     # (B, S, 2)
    o = jnp.transpose(o, (0, 2, 1))          # (B, 2, S)
    o = o @ w3.T + b3[0]                     # (B, 2, 1)
    return jax.nn.softmax(o, axis=1)


if __name__ == "__main__":
    # Full-f32 matmuls in the offline fold and the reference so the only
    # remaining divergence vs. the reference is MXU rounding in the small
    # in-kernel pooling matmul.
    jax.config.update("jax_default_matmul_precision", "float32")

    B, S, V = 8, 8, 32
    key = jax.random.PRNGKey(0)
    k_ids, k_params = jax.random.split(key)

    x_ids = jax.random.randint(k_ids, (B, S), 0, V, dtype=jnp.int32)
    params = init_params(k_params, V, S)

    out = neural_network_forward(x_ids, params)
    out = jax.block_until_ready(out)

    ref = reference_forward(x_ids, params)
    assert out.shape == (B, 2, 1)
    assert jnp.allclose(out, ref, atol=2e-4, rtol=2e-4), \
        float(jnp.max(jnp.abs(out - ref)))
    print("KERNEL_OK")
</pallas_src>

<mosaic_0001>
module attributes {stable_mosaic.version = 11 : i64} {
  func.func @fused_nn_kernel(%arg0: i32, %arg1: memref<8x8xi32, #tpu.memory_space<smem>>, %arg2: memref<4x32xf32, #tpu.memory_space<vmem>>, %arg3: memref<32x128xf32, #tpu.memory_space<vmem>>, %arg4: memref<1x2xf32, #tpu.memory_space<vmem>>, %arg5: memref<4x1x2xf32, #tpu.memory_space<vmem>>, %arg6: memref<32x128xf32, #tpu.memory_space<vmem>>) attributes {dimension_semantics = [#tpu.dimension_semantics<parallel>], iteration_bounds = array<i64: 2>, scalar_prefetch = 1 : i64, scratch_operands = 1 : i64, tpu.core_type = #tpu.core_type<tc>, window_params = [{pipeline_mode = #tpu.pipeline_mode<synchronous>, transform_indices = @transform_0, window_bounds = array<i64: 4, 32>}, {pipeline_mode = #tpu.pipeline_mode<synchronous>, transform_indices = @transform_1, window_bounds = array<i64: 32, 128>}, {pipeline_mode = #tpu.pipeline_mode<synchronous>, transform_indices = @transform_2, window_bounds = array<i64: 1, 2>}, {transform_indices = @transform_3, window_bounds = array<i64: 4, 1, 2>}]} {
    %c4_i32 = arith.constant 4 : i32
    %0 = arith.muli %arg0, %c4_i32 : i32
    %c0_i32 = arith.constant 0 : i32
    %1 = arith.addi %0, %c0_i32 : i32
    %2 = arith.index_cast %1 : i32 to index
    %c0 = arith.constant 0 : index
    %3 = memref.load %arg1[%2, %c0] : memref<8x8xi32, #tpu.memory_space<smem>>
    %c0_i32_0 = arith.constant 0 : i32
    %c31_i32 = arith.constant 31 : i32
    %4 = arith.maxsi %c0_i32_0, %3 : i32
    %5 = arith.minsi %c31_i32, %4 : i32
    %6 = arith.index_cast %5 : i32 to index
    %c0_1 = arith.constant 0 : index
    %7 = vector.load %arg3[%6, %c0_1] : memref<32x128xf32, #tpu.memory_space<vmem>>, vector<1x128xf32>
    %c0_2 = arith.constant 0 : index
    %c0_3 = arith.constant 0 : index
    %8 = vector.load %arg6[%c0_2, %c0_3] : memref<32x128xf32, #tpu.memory_space<vmem>>, vector<1x128xf32>
    tpu.vector_store %arg6[%c0_2, %c0_3], %7 {strides = array<i32>} : memref<32x128xf32, #tpu.memory_space<vmem>>, vector<1x128xf32>,
    %c0_i32_4 = arith.constant 0 : i32
    %9 = arith.addi %0, %c0_i32_4 : i32
    %10 = arith.index_cast %9 : i32 to index
    %c1 = arith.constant 1 : index
    %11 = memref.load %arg1[%10, %c1] : memref<8x8xi32, #tpu.memory_space<smem>>
    %c0_i32_5 = arith.constant 0 : i32
    %c31_i32_6 = arith.constant 31 : i32
    %12 = arith.maxsi %c0_i32_5, %11 : i32
    %13 = arith.minsi %c31_i32_6, %12 : i32
    %14 = arith.index_cast %13 : i32 to index
    %c0_7 = arith.constant 0 : index
    %15 = vector.load %arg3[%14, %c0_7] : memref<32x128xf32, #tpu.memory_space<vmem>>, vector<1x128xf32>
    %c1_8 = arith.constant 1 : index
    %c0_9 = arith.constant 0 : index
    %16 = vector.load %arg6[%c1_8, %c0_9] : memref<32x128xf32, #tpu.memory_space<vmem>>, vector<1x128xf32>
    tpu.vector_store %arg6[%c1_8, %c0_9], %15 {strides = array<i32>} : memref<32x128xf32, #tpu.memory_space<vmem>>, vector<1x128xf32>,
    %c0_i32_10 = arith.constant 0 : i32
    %17 = arith.addi %0, %c0_i32_10 : i32
    %18 = arith.index_cast %17 : i32 to index
    %c2 = arith.constant 2 : index
    %19 = memref.load %arg1[%18, %c2] : memref<8x8xi32, #tpu.memory_space<smem>>
    %c0_i32_11 = arith.constant 0 : i32
    %c31_i32_12 = arith.constant 31 : i32
    %20 = arith.maxsi %c0_i32_11, %19 : i32
    %21 = arith.minsi %c31_i32_12, %20 : i32
    %22 = arith.index_cast %21 : i32 to index
    %c0_13 = arith.constant 0 : index
    %23 = vector.load %arg3[%22, %c0_13] : memref<32x128xf32, #tpu.memory_space<vmem>>, vector<1x128xf32>
    %c2_14 = arith.constant 2 : index
    %c0_15 = arith.constant 0 : index
    %24 = vector.load %arg6[%c2_14, %c0_15] : memref<32x128xf32, #tpu.memory_space<vmem>>, vector<1x128xf32>
    tpu.vector_store %arg6[%c2_14, %c0_15], %23 {strides = array<i32>} : memref<32x128xf32, #tpu.memory_space<vmem>>, vector<1x128xf32>,
    %c0_i32_16 = arith.constant 0 : i32
    %25 = arith.addi %0, %c0_i32_16 : i32
    %26 = arith.index_cast %25 : i32 to index
    %c3 = arith.constant 3 : index
    %27 = memref.load %arg1[%26, %c3] : memref<8x8xi32, #tpu.memory_space<smem>>
    %c0_i32_17 = arith.constant 0 : i32
    %c31_i32_18 = arith.constant 31 : i32
    %28 = arith.maxsi %c0_i32_17, %27 : i32
    %29 = arith.minsi %c31_i32_18, %28 : i32
    %30 = arith.index_cast %29 : i32 to index
    %c0_19 = arith.constant 0 : index
    %31 = vector.load %arg3[%30, %c0_19] : memref<32x128xf32, #tpu.memory_space<vmem>>, vector<1x128xf32>
    %c3_20 = arith.constant 3 : index
    %c0_21 = arith.constant 0 : index
    %32 = vector.load %arg6[%c3_20, %c0_21] : memref<32x128xf32, #tpu.memory_space<vmem>>, vector<1x128xf32>
    tpu.vector_store %arg6[%c3_20, %c0_21], %31 {strides = array<i32>} : memref<32x128xf32, #tpu.memory_space<vmem>>, vector<1x128xf32>,
    %c0_i32_22 = arith.constant 0 : i32
    %33 = arith.addi %0, %c0_i32_22 : i32
    %34 = arith.index_cast %33 : i32 to index
    %c4 = arith.constant 4 : index
    %35 = memref.load %arg1[%34, %c4] : memref<8x8xi32, #tpu.memory_space<smem>>
    %c0_i32_23 = arith.constant 0 : i32
    %c31_i32_24 = arith.constant 31 : i32
    %36 = arith.maxsi %c0_i32_23, %35 : i32
    %37 = arith.minsi %c31_i32_24, %36 : i32
    %38 = arith.index_cast %37 : i32 to index
    %c0_25 = arith.constant 0 : index
    %39 = vector.load %arg3[%38, %c0_25] : memref<32x128xf32, #tpu.memory_space<vmem>>, vector<1x128xf32>
    %c4_26 = arith.constant 4 : index
    %c0_27 = arith.constant 0 : index
    %40 = vector.load %arg6[%c4_26, %c0_27] : memref<32x128xf32, #tpu.memory_space<vmem>>, vector<1x128xf32>
    tpu.vector_store %arg6[%c4_26, %c0_27], %39 {strides = array<i32>} : memref<32x128xf32, #tpu.memory_space<vmem>>, vector<1x128xf32>,
    %c0_i32_28 = arith.constant 0 : i32
    %41 = arith.addi %0, %c0_i32_28 : i32
    %42 = arith.index_cast %41 : i32 to index
    %c5 = arith.constant 5 : index
    %43 = memref.load %arg1[%42, %c5] : memref<8x8xi32, #tpu.memory_space<smem>>
    %c0_i32_29 = arith.constant 0 : i32
    %c31_i32_30 = arith.constant 31 : i32
    %44 = arith.maxsi %c0_i32_29, %43 : i32
    %45 = arith.minsi %c31_i32_30, %44 : i32
    %46 = arith.index_cast %45 : i32 to index
    %c0_31 = arith.constant 0 : index
    %47 = vector.load %arg3[%46, %c0_31] : memref<32x128xf32, #tpu.memory_space<vmem>>, vector<1x128xf32>
    %c5_32 = arith.constant 5 : index
    %c0_33 = arith.constant 0 : index
    %48 = vector.load %arg6[%c5_32, %c0_33] : memref<32x128xf32, #tpu.memory_space<vmem>>, vector<1x128xf32>
    tpu.vector_store %arg6[%c5_32, %c0_33], %47 {strides = array<i32>} : memref<32x128xf32, #tpu.memory_space<vmem>>, vector<1x128xf32>,
    %c0_i32_34 = arith.constant 0 : i32
    %49 = arith.addi %0, %c0_i32_34 : i32
    %50 = arith.index_cast %49 : i32 to index
    %c6 = arith.constant 6 : index
    %51 = memref.load %arg1[%50, %c6] : memref<8x8xi32, #tpu.memory_space<smem>>
    %c0_i32_35 = arith.constant 0 : i32
    %c31_i32_36 = arith.constant 31 : i32
    %52 = arith.maxsi %c0_i32_35, %51 : i32
    %53 = arith.minsi %c31_i32_36, %52 : i32
    %54 = arith.index_cast %53 : i32 to index
    %c0_37 = arith.constant 0 : index
    %55 = vector.load %arg3[%54, %c0_37] : memref<32x128xf32, #tpu.memory_space<vmem>>, vector<1x128xf32>
    %c6_38 = arith.constant 6 : index
    %c0_39 = arith.constant 0 : index
    %56 = vector.load %arg6[%c6_38, %c0_39] : memref<32x128xf32, #tpu.memory_space<vmem>>, vector<1x128xf32>
    tpu.vector_store %arg6[%c6_38, %c0_39], %55 {strides = array<i32>} : memref<32x128xf32, #tpu.memory_space<vmem>>, vector<1x128xf32>,
    %c0_i32_40 = arith.constant 0 : i32
    %57 = arith.addi %0, %c0_i32_40 : i32
    %58 = arith.index_cast %57 : i32 to index
    %c7 = arith.constant 7 : index
    %59 = memref.load %arg1[%58, %c7] : memref<8x8xi32, #tpu.memory_space<smem>>
    %c0_i32_41 = arith.constant 0 : i32
    %c31_i32_42 = arith.constant 31 : i32
    %60 = arith.maxsi %c0_i32_41, %59 : i32
    %61 = arith.minsi %c31_i32_42, %60 : i32
    %62 = arith.index_cast %61 : i32 to index
    %c0_43 = arith.constant 0 : index
    %63 = vector.load %arg3[%62, %c0_43] : memref<32x128xf32, #tpu.memory_space<vmem>>, vector<1x128xf32>
    %c7_44 = arith.constant 7 : index
    %c0_45 = arith.constant 0 : index
    %64 = vector.load %arg6[%c7_44, %c0_45] : memref<32x128xf32, #tpu.memory_space<vmem>>, vector<1x128xf32>
    tpu.vector_store %arg6[%c7_44, %c0_45], %63 {strides = array<i32>} : memref<32x128xf32, #tpu.memory_space<vmem>>, vector<1x128xf32>,
    %c1_i32 = arith.constant 1 : i32
    %65 = arith.addi %0, %c1_i32 : i32
    %66 = arith.index_cast %65 : i32 to index
    %c0_46 = arith.constant 0 : index
    %67 = memref.load %arg1[%66, %c0_46] : memref<8x8xi32, #tpu.memory_space<smem>>
    %c0_i32_47 = arith.constant 0 : i32
    %c31_i32_48 = arith.constant 31 : i32
    %68 = arith.maxsi %c0_i32_47, %67 : i32
    %69 = arith.minsi %c31_i32_48, %68 : i32
    %70 = arith.index_cast %69 : i32 to index
    %c0_49 = arith.constant 0 : index
    %71 = vector.load %arg3[%70, %c0_49] : memref<32x128xf32, #tpu.memory_space<vmem>>, vector<1x128xf32>
    %c8 = arith.constant 8 : index
    %c0_50 = arith.constant 0 : index
    %72 = vector.load %arg6[%c8, %c0_50] : memref<32x128xf32, #tpu.memory_space<vmem>>, vector<1x128xf32>
    tpu.vector_store %arg6[%c8, %c0_50], %71 {strides = array<i32>} : memref<32x128xf32, #tpu.memory_space<vmem>>, vector<1x128xf32>,
    %c1_i32_51 = arith.constant 1 : i32
    %73 = arith.addi %0, %c1_i32_51 : i32
    %74 = arith.index_cast %73 : i32 to index
    %c1_52 = arith.constant 1 : index
    %75 = memref.load %arg1[%74, %c1_52] : memref<8x8xi32, #tpu.memory_space<smem>>
    %c0_i32_53 = arith.constant 0 : i32
    %c31_i32_54 = arith.constant 31 : i32
    %76 = arith.maxsi %c0_i32_53, %75 : i32
    %77 = arith.minsi %c31_i32_54, %76 : i32
    %78 = arith.index_cast %77 : i32 to index
    %c0_55 = arith.constant 0 : index
    %79 = vector.load %arg3[%78, %c0_55] : memref<32x128xf32, #tpu.memory_space<vmem>>, vector<1x128xf32>
    %c9 = arith.constant 9 : index
    %c0_56 = arith.constant 0 : index
    %80 = vector.load %arg6[%c9, %c0_56] : memref<32x128xf32, #tpu.memory_space<vmem>>, vector<1x128xf32>
    tpu.vector_store %arg6[%c9, %c0_56], %79 {strides = array<i32>} : memref<32x128xf32, #tpu.memory_space<vmem>>, vector<1x128xf32>,
    %c1_i32_57 = arith.constant 1 : i32
    %81 = arith.addi %0, %c1_i32_57 : i32
    %82 = arith.index_cast %81 : i32 to index
    %c2_58 = arith.constant 2 : index
    %83 = memref.load %arg1[%82, %c2_58] : memref<8x8xi32, #tpu.memory_space<smem>>
    %c0_i32_59 = arith.constant 0 : i32
    %c31_i32_60 = arith.constant 31 : i32
    %84 = arith.maxsi %c0_i32_59, %83 : i32
    %85 = arith.minsi %c31_i32_60, %84 : i32
    %86 = arith.index_cast %85 : i32 to index
    %c0_61 = arith.constant 0 : index
    %87 = vector.load %arg3[%86, %c0_61] : memref<32x128xf32, #tpu.memory_space<vmem>>, vector<1x128xf32>
    %c10 = arith.constant 10 : index
    %c0_62 = arith.constant 0 : index
    %88 = vector.load %arg6[%c10, %c0_62] : memref<32x128xf32, #tpu.memory_space<vmem>>, vector<1x128xf32>
    tpu.vector_store %arg6[%c10, %c0_62], %87 {strides = array<i32>} : memref<32x128xf32, #tpu.memory_space<vmem>>, vector<1x128xf32>,
    %c1_i32_63 = arith.constant 1 : i32
    %89 = arith.addi %0, %c1_i32_63 : i32
    %90 = arith.index_cast %89 : i32 to index
    %c3_64 = arith.constant 3 : index
    %91 = memref.load %arg1[%90, %c3_64] : memref<8x8xi32, #tpu.memory_space<smem>>
    %c0_i32_65 = arith.constant 0 : i32
    %c31_i32_66 = arith.constant 31 : i32
    %92 = arith.maxsi %c0_i32_65, %91 : i32
    %93 = arith.minsi %c31_i32_66, %92 : i32
    %94 = arith.index_cast %93 : i32 to index
    %c0_67 = arith.constant 0 : index
    %95 = vector.load %arg3[%94, %c0_67] : memref<32x128xf32, #tpu.memory_space<vmem>>, vector<1x128xf32>
    %c11 = arith.constant 11 : index
    %c0_68 = arith.constant 0 : index
    %96 = vector.load %arg6[%c11, %c0_68] : memref<32x128xf32, #tpu.memory_space<vmem>>, vector<1x128xf32>
    tpu.vector_store %arg6[%c11, %c0_68], %95 {strides = array<i32>} : memref<32x128xf32, #tpu.memory_space<vmem>>, vector<1x128xf32>,
    %c1_i32_69 = arith.constant 1 : i32
    %97 = arith.addi %0, %c1_i32_69 : i32
    %98 = arith.index_cast %97 : i32 to index
    %c4_70 = arith.constant 4 : index
    %99 = memref.load %arg1[%98, %c4_70] : memref<8x8xi32, #tpu.memory_space<smem>>
    %c0_i32_71 = arith.constant 0 : i32
    %c31_i32_72 = arith.constant 31 : i32
    %100 = arith.maxsi %c0_i32_71, %99 : i32
    %101 = arith.minsi %c31_i32_72, %100 : i32
    %102 = arith.index_cast %101 : i32 to index
    %c0_73 = arith.constant 0 : index
    %103 = vector.load %arg3[%102, %c0_73] : memref<32x128xf32, #tpu.memory_space<vmem>>, vector<1x128xf32>
    %c12 = arith.constant 12 : index
    %c0_74 = arith.constant 0 : index
    %104 = vector.load %arg6[%c12, %c0_74] : memref<32x128xf32, #tpu.memory_space<vmem>>, vector<1x128xf32>
    tpu.vector_store %arg6[%c12, %c0_74], %103 {strides = array<i32>} : memref<32x128xf32, #tpu.memory_space<vmem>>, vector<1x128xf32>,
    %c1_i32_75 = arith.constant 1 : i32
    %105 = arith.addi %0, %c1_i32_75 : i32
    %106 = arith.index_cast %105 : i32 to index
    %c5_76 = arith.constant 5 : index
    %107 = memref.load %arg1[%106, %c5_76] : memref<8x8xi32, #tpu.memory_space<smem>>
    %c0_i32_77 = arith.constant 0 : i32
    %c31_i32_78 = arith.constant 31 : i32
    %108 = arith.maxsi %c0_i32_77, %107 : i32
    %109 = arith.minsi %c31_i32_78, %108 : i32
    %110 = arith.index_cast %109 : i32 to index
    %c0_79 = arith.constant 0 : index
    %111 = vector.load %arg3[%110, %c0_79] : memref<32x128xf32, #tpu.memory_space<vmem>>, vector<1x128xf32>
    %c13 = arith.constant 13 : index
    %c0_80 = arith.constant 0 : index
    %112 = vector.load %arg6[%c13, %c0_80] : memref<32x128xf32, #tpu.memory_space<vmem>>, vector<1x128xf32>
    tpu.vector_store %arg6[%c13, %c0_80], %111 {strides = array<i32>} : memref<32x128xf32, #tpu.memory_space<vmem>>, vector<1x128xf32>,
    %c1_i32_81 = arith.constant 1 : i32
    %113 = arith.addi %0, %c1_i32_81 : i32
    %114 = arith.index_cast %113 : i32 to index
    %c6_82 = arith.constant 6 : index
    %115 = memref.load %arg1[%114, %c6_82] : memref<8x8xi32, #tpu.memory_space<smem>>
    %c0_i32_83 = arith.constant 0 : i32
    %c31_i32_84 = arith.constant 31 : i32
    %116 = arith.maxsi %c0_i32_83, %115 : i32
    %117 = arith.minsi %c31_i32_84, %116 : i32
    %118 = arith.index_cast %117 : i32 to index
    %c0_85 = arith.constant 0 : index
    %119 = vector.load %arg3[%118, %c0_85] : memref<32x128xf32, #tpu.memory_space<vmem>>, vector<1x128xf32>
    %c14 = arith.constant 14 : index
    %c0_86 = arith.constant 0 : index
    %120 = vector.load %arg6[%c14, %c0_86] : memref<32x128xf32, #tpu.memory_space<vmem>>, vector<1x128xf32>
    tpu.vector_store %arg6[%c14, %c0_86], %119 {strides = array<i32>} : memref<32x128xf32, #tpu.memory_space<vmem>>, vector<1x128xf32>,
    %c1_i32_87 = arith.constant 1 : i32
    %121 = arith.addi %0, %c1_i32_87 : i32
    %122 = arith.index_cast %121 : i32 to index
    %c7_88 = arith.constant 7 : index
    %123 = memref.load %arg1[%122, %c7_88] : memref<8x8xi32, #tpu.memory_space<smem>>
    %c0_i32_89 = arith.constant 0 : i32
    %c31_i32_90 = arith.constant 31 : i32
    %124 = arith.maxsi %c0_i32_89, %123 : i32
    %125 = arith.minsi %c31_i32_90, %124 : i32
    %126 = arith.index_cast %125 : i32 to index
    %c0_91 = arith.constant 0 : index
    %127 = vector.load %arg3[%126, %c0_91] : memref<32x128xf32, #tpu.memory_space<vmem>>, vector<1x128xf32>
    %c15 = arith.constant 15 : index
    %c0_92 = arith.constant 0 : index
    %128 = vector.load %arg6[%c15, %c0_92] : memref<32x128xf32, #tpu.memory_space<vmem>>, vector<1x128xf32>
    tpu.vector_store %arg6[%c15, %c0_92], %127 {strides = array<i32>} : memref<32x128xf32, #tpu.memory_space<vmem>>, vector<1x128xf32>,
    %c2_i32 = arith.constant 2 : i32
    %129 = arith.addi %0, %c2_i32 : i32
    %130 = arith.index_cast %129 : i32 to index
    %c0_93 = arith.constant 0 : index
    %131 = memref.load %arg1[%130, %c0_93] : memref<8x8xi32, #tpu.memory_space<smem>>
    %c0_i32_94 = arith.constant 0 : i32
    %c31_i32_95 = arith.constant 31 : i32
    %132 = arith.maxsi %c0_i32_94, %131 : i32
    %133 = arith.minsi %c31_i32_95, %132 : i32
    %134 = arith.index_cast %133 : i32 to index
    %c0_96 = arith.constant 0 : index
    %135 = vector.load %arg3[%134, %c0_96] : memref<32x128xf32, #tpu.memory_space<vmem>>, vector<1x128xf32>
    %c16 = arith.constant 16 : index
    %c0_97 = arith.constant 0 : index
    %136 = vector.load %arg6[%c16, %c0_97] : memref<32x128xf32, #tpu.memory_space<vmem>>, vector<1x128xf32>
    tpu.vector_store %arg6[%c16, %c0_97], %135 {strides = array<i32>} : memref<32x128xf32, #tpu.memory_space<vmem>>, vector<1x128xf32>,
    %c2_i32_98 = arith.constant 2 : i32
    %137 = arith.addi %0, %c2_i32_98 : i32
    %138 = arith.index_cast %137 : i32 to index
    %c1_99 = arith.constant 1 : index
    %139 = memref.load %arg1[%138, %c1_99] : memref<8x8xi32, #tpu.memory_space<smem>>
    %c0_i32_100 = arith.constant 0 : i32
    %c31_i32_101 = arith.constant 31 : i32
    %140 = arith.maxsi %c0_i32_100, %139 : i32
    %141 = arith.minsi %c31_i32_101, %140 : i32
    %142 = arith.index_cast %141 : i32 to index
    %c0_102 = arith.constant 0 : index
    %143 = vector.load %arg3[%142, %c0_102] : memref<32x128xf32, #tpu.memory_space<vmem>>, vector<1x128xf32>
    %c17 = arith.constant 17 : index
    %c0_103 = arith.constant 0 : index
    %144 = vector.load %arg6[%c17, %c0_103] : memref<32x128xf32, #tpu.memory_space<vmem>>, vector<1x128xf32>
    tpu.vector_store %arg6[%c17, %c0_103], %143 {strides = array<i32>} : memref<32x128xf32, #tpu.memory_space<vmem>>, vector<1x128xf32>,
    %c2_i32_104 = arith.constant 2 : i32
    %145 = arith.addi %0, %c2_i32_104 : i32
    %146 = arith.index_cast %145 : i32 to index
    %c2_105 = arith.constant 2 : index
    %147 = memref.load %arg1[%146, %c2_105] : memref<8x8xi32, #tpu.memory_space<smem>>
    %c0_i32_106 = arith.constant 0 : i32
    %c31_i32_107 = arith.constant 31 : i32
    %148 = arith.maxsi %c0_i32_106, %147 : i32
    %149 = arith.minsi %c31_i32_107, %148 : i32
    %150 = arith.index_cast %149 : i32 to index
    %c0_108 = arith.constant 0 : index
    %151 = vector.load %arg3[%150, %c0_108] : memref<32x128xf32, #tpu.memory_space<vmem>>, vector<1x128xf32>
    %c18 = arith.constant 18 : index
    %c0_109 = arith.constant 0 : index
    %152 = vector.load %arg6[%c18, %c0_109] : memref<32x128xf32, #tpu.memory_space<vmem>>, vector<1x128xf32>
    tpu.vector_store %arg6[%c18, %c0_109], %151 {strides = array<i32>} : memref<32x128xf32, #tpu.memory_space<vmem>>, vector<1x128xf32>,
    %c2_i32_110 = arith.constant 2 : i32
    %153 = arith.addi %0, %c2_i32_110 : i32
    %154 = arith.index_cast %153 : i32 to index
    %c3_111 = arith.constant 3 : index
    %155 = memref.load %arg1[%154, %c3_111] : memref<8x8xi32, #tpu.memory_space<smem>>
    %c0_i32_112 = arith.constant 0 : i32
    %c31_i32_113 = arith.constant 31 : i32
    %156 = arith.maxsi %c0_i32_112, %155 : i32
    %157 = arith.minsi %c31_i32_113, %156 : i32
    %158 = arith.index_cast %157 : i32 to index
    %c0_114 = arith.constant 0 : index
    %159 = vector.load %arg3[%158, %c0_114] : memref<32x128xf32, #tpu.memory_space<vmem>>, vector<1x128xf32>
    %c19 = arith.constant 19 : index
    %c0_115 = arith.constant 0 : index
    %160 = vector.load %arg6[%c19, %c0_115] : memref<32x128xf32, #tpu.memory_space<vmem>>, vector<1x128xf32>
    tpu.vector_store %arg6[%c19, %c0_115], %159 {strides = array<i32>} : memref<32x128xf32, #tpu.memory_space<vmem>>, vector<1x128xf32>,
    %c2_i32_116 = arith.constant 2 : i32
    %161 = arith.addi %0, %c2_i32_116 : i32
    %162 = arith.index_cast %161 : i32 to index
    %c4_117 = arith.constant 4 : index
    %163 = memref.load %arg1[%162, %c4_117] : memref<8x8xi32, #tpu.memory_space<smem>>
    %c0_i32_118 = arith.constant 0 : i32
    %c31_i32_119 = arith.constant 31 : i32
    %164 = arith.maxsi %c0_i32_118, %163 : i32
    %165 = arith.minsi %c31_i32_119, %164 : i32
    %166 = arith.index_cast %165 : i32 to index
    %c0_120 = arith.constant 0 : index
    %167 = vector.load %arg3[%166, %c0_120] : memref<32x128xf32, #tpu.memory_space<vmem>>, vector<1x128xf32>
    %c20 = arith.constant 20 : index
    %c0_121 = arith.constant 0 : index
    %168 = vector.load %arg6[%c20, %c0_121] : memref<32x128xf32, #tpu.memory_space<vmem>>, vector<1x128xf32>
    tpu.vector_store %arg6[%c20, %c0_121], %167 {strides = array<i32>} : memref<32x128xf32, #tpu.memory_space<vmem>>, vector<1x128xf32>,
    %c2_i32_122 = arith.constant 2 : i32
    %169 = arith.addi %0, %c2_i32_122 : i32
    %170 = arith.index_cast %169 : i32 to index
    %c5_123 = arith.constant 5 : index
    %171 = memref.load %arg1[%170, %c5_123] : memref<8x8xi32, #tpu.memory_space<smem>>
    %c0_i32_124 = arith.constant 0 : i32
    %c31_i32_125 = arith.constant 31 : i32
    %172 = arith.maxsi %c0_i32_124, %171 : i32
    %173 = arith.minsi %c31_i32_125, %172 : i32
    %174 = arith.index_cast %173 : i32 to index
    %c0_126 = arith.constant 0 : index
    %175 = vector.load %arg3[%174, %c0_126] : memref<32x128xf32, #tpu.memory_space<vmem>>, vector<1x128xf32>
    %c21 = arith.constant 21 : index
    %c0_127 = arith.constant 0 : index
    %176 = vector.load %arg6[%c21, %c0_127] : memref<32x128xf32, #tpu.memory_space<vmem>>, vector<1x128xf32>
    tpu.vector_store %arg6[%c21, %c0_127], %175 {strides = array<i32>} : memref<32x128xf32, #tpu.memory_space<vmem>>, vector<1x128xf32>,
    %c2_i32_128 = arith.constant 2 : i32
    %177 = arith.addi %0, %c2_i32_128 : i32
    %178 = arith.index_cast %177 : i32 to index
    %c6_129 = arith.constant 6 : index
    %179 = memref.load %arg1[%178, %c6_129] : memref<8x8xi32, #tpu.memory_space<smem>>
    %c0_i32_130 = arith.constant 0 : i32
    %c31_i32_131 = arith.constant 31 : i32
    %180 = arith.maxsi %c0_i32_130, %179 : i32
    %181 = arith.minsi %c31_i32_131, %180 : i32
    %182 = arith.index_cast %181 : i32 to index
    %c0_132 = arith.constant 0 : index
    %183 = vector.load %arg3[%182, %c0_132] : memref<32x128xf32, #tpu.memory_space<vmem>>, vector<1x128xf32>
    %c22 = arith.constant 22 : index
    %c0_133 = arith.constant 0 : index
    %184 = vector.load %arg6[%c22, %c0_133] : memref<32x128xf32, #tpu.memory_space<vmem>>, vector<1x128xf32>
    tpu.vector_store %arg6[%c22, %c0_133], %183 {strides = array<i32>} : memref<32x128xf32, #tpu.memory_space<vmem>>, vector<1x128xf32>,
    %c2_i32_134 = arith.constant 2 : i32
    %185 = arith.addi %0, %c2_i32_134 : i32
    %186 = arith.index_cast %185 : i32 to index
    %c7_135 = arith.constant 7 : index
    %187 = memref.load %arg1[%186, %c7_135] : memref<8x8xi32, #tpu.memory_space<smem>>
    %c0_i32_136 = arith.constant 0 : i32
    %c31_i32_137 = arith.constant 31 : i32
    %188 = arith.maxsi %c0_i32_136, %187 : i32
    %189 = arith.minsi %c31_i32_137, %188 : i32
    %190 = arith.index_cast %189 : i32 to index
    %c0_138 = arith.constant 0 : index
    %191 = vector.load %arg3[%190, %c0_138] : memref<32x128xf32, #tpu.memory_space<vmem>>, vector<1x128xf32>
    %c23 = arith.constant 23 : index
    %c0_139 = arith.constant 0 : index
    %192 = vector.load %arg6[%c23, %c0_139] : memref<32x128xf32, #tpu.memory_space<vmem>>, vector<1x128xf32>
    tpu.vector_store %arg6[%c23, %c0_139], %191 {strides = array<i32>} : memref<32x128xf32, #tpu.memory_space<vmem>>, vector<1x128xf32>,
    %c3_i32 = arith.constant 3 : i32
    %193 = arith.addi %0, %c3_i32 : i32
    %194 = arith.index_cast %193 : i32 to index
    %c0_140 = arith.constant 0 : index
    %195 = memref.load %arg1[%194, %c0_140] : memref<8x8xi32, #tpu.memory_space<smem>>
    %c0_i32_141 = arith.constant 0 : i32
    %c31_i32_142 = arith.constant 31 : i32
    %196 = arith.maxsi %c0_i32_141, %195 : i32
    %197 = arith.minsi %c31_i32_142, %196 : i32
    %198 = arith.index_cast %197 : i32 to index
    %c0_143 = arith.constant 0 : index
    %199 = vector.load %arg3[%198, %c0_143] : memref<32x128xf32, #tpu.memory_space<vmem>>, vector<1x128xf32>
    %c24 = arith.constant 24 : index
    %c0_144 = arith.constant 0 : index
    %200 = vector.load %arg6[%c24, %c0_144] : memref<32x128xf32, #tpu.memory_space<vmem>>, vector<1x128xf32>
    tpu.vector_store %arg6[%c24, %c0_144], %199 {strides = array<i32>} : memref<32x128xf32, #tpu.memory_space<vmem>>, vector<1x128xf32>,
    %c3_i32_145 = arith.constant 3 : i32
    %201 = arith.addi %0, %c3_i32_145 : i32
    %202 = arith.index_cast %201 : i32 to index
    %c1_146 = arith.constant 1 : index
    %203 = memref.load %arg1[%202, %c1_146] : memref<8x8xi32, #tpu.memory_space<smem>>
    %c0_i32_147 = arith.constant 0 : i32
    %c31_i32_148 = arith.constant 31 : i32
    %204 = arith.maxsi %c0_i32_147, %203 : i32
    %205 = arith.minsi %c31_i32_148, %204 : i32
    %206 = arith.index_cast %205 : i32 to index
    %c0_149 = arith.constant 0 : index
    %207 = vector.load %arg3[%206, %c0_149] : memref<32x128xf32, #tpu.memory_space<vmem>>, vector<1x128xf32>
    %c25 = arith.constant 25 : index
    %c0_150 = arith.constant 0 : index
    %208 = vector.load %arg6[%c25, %c0_150] : memref<32x128xf32, #tpu.memory_space<vmem>>, vector<1x128xf32>
    tpu.vector_store %arg6[%c25, %c0_150], %207 {strides = array<i32>} : memref<32x128xf32, #tpu.memory_space<vmem>>, vector<1x128xf32>,
    %c3_i32_151 = arith.constant 3 : i32
    %209 = arith.addi %0, %c3_i32_151 : i32
    %210 = arith.index_cast %209 : i32 to index
    %c2_152 = arith.constant 2 : index
    %211 = memref.load %arg1[%210, %c2_152] : memref<8x8xi32, #tpu.memory_space<smem>>
    %c0_i32_153 = arith.constant 0 : i32
    %c31_i32_154 = arith.constant 31 : i32
    %212 = arith.maxsi %c0_i32_153, %211 : i32
    %213 = arith.minsi %c31_i32_154, %212 : i32
    %214 = arith.index_cast %213 : i32 to index
    %c0_155 = arith.constant 0 : index
    %215 = vector.load %arg3[%214, %c0_155] : memref<32x128xf32, #tpu.memory_space<vmem>>, vector<1x128xf32>
    %c26 = arith.constant 26 : index
    %c0_156 = arith.constant 0 : index
    %216 = vector.load %arg6[%c26, %c0_156] : memref<32x128xf32, #tpu.memory_space<vmem>>, vector<1x128xf32>
    tpu.vector_store %arg6[%c26, %c0_156], %215 {strides = array<i32>} : memref<32x128xf32, #tpu.memory_space<vmem>>, vector<1x128xf32>,
    %c3_i32_157 = arith.constant 3 : i32
    %217 = arith.addi %0, %c3_i32_157 : i32
    %218 = arith.index_cast %217 : i32 to index
    %c3_158 = arith.constant 3 : index
    %219 = memref.load %arg1[%218, %c3_158] : memref<8x8xi32, #tpu.memory_space<smem>>
    %c0_i32_159 = arith.constant 0 : i32
    %c31_i32_160 = arith.constant 31 : i32
    %220 = arith.maxsi %c0_i32_159, %219 : i32
    %221 = arith.minsi %c31_i32_160, %220 : i32
    %222 = arith.index_cast %221 : i32 to index
    %c0_161 = arith.constant 0 : index
    %223 = vector.load %arg3[%222, %c0_161] : memref<32x128xf32, #tpu.memory_space<vmem>>, vector<1x128xf32>
    %c27 = arith.constant 27 : index
    %c0_162 = arith.constant 0 : index
    %224 = vector.load %arg6[%c27, %c0_162] : memref<32x128xf32, #tpu.memory_space<vmem>>, vector<1x128xf32>
    tpu.vector_store %arg6[%c27, %c0_162], %223 {strides = array<i32>} : memref<32x128xf32, #tpu.memory_space<vmem>>, vector<1x128xf32>,
    %c3_i32_163 = arith.constant 3 : i32
    %225 = arith.addi %0, %c3_i32_163 : i32
    %226 = arith.index_cast %225 : i32 to index
    %c4_164 = arith.constant 4 : index
    %227 = memref.load %arg1[%226, %c4_164] : memref<8x8xi32, #tpu.memory_space<smem>>
    %c0_i32_165 = arith.constant 0 : i32
    %c31_i32_166 = arith.constant 31 : i32
    %228 = arith.maxsi %c0_i32_165, %227 : i32
    %229 = arith.minsi %c31_i32_166, %228 : i32
    %230 = arith.index_cast %229 : i32 to index
    %c0_167 = arith.constant 0 : index
    %231 = vector.load %arg3[%230, %c0_167] : memref<32x128xf32, #tpu.memory_space<vmem>>, vector<1x128xf32>
    %c28 = arith.constant 28 : index
    %c0_168 = arith.constant 0 : index
    %232 = vector.load %arg6[%c28, %c0_168] : memref<32x128xf32, #tpu.memory_space<vmem>>, vector<1x128xf32>
    tpu.vector_store %arg6[%c28, %c0_168], %231 {strides = array<i32>} : memref<32x128xf32, #tpu.memory_space<vmem>>, vector<1x128xf32>,
    %c3_i32_169 = arith.constant 3 : i32
    %233 = arith.addi %0, %c3_i32_169 : i32
    %234 = arith.index_cast %233 : i32 to index
    %c5_170 = arith.constant 5 : index
    %235 = memref.load %arg1[%234, %c5_170] : memref<8x8xi32, #tpu.memory_space<smem>>
    %c0_i32_171 = arith.constant 0 : i32
    %c31_i32_172 = arith.constant 31 : i32
    %236 = arith.maxsi %c0_i32_171, %235 : i32
    %237 = arith.minsi %c31_i32_172, %236 : i32
    %238 = arith.index_cast %237 : i32 to index
    %c0_173 = arith.constant 0 : index
    %239 = vector.load %arg3[%238, %c0_173] : memref<32x128xf32, #tpu.memory_space<vmem>>, vector<1x128xf32>
    %c29 = arith.constant 29 : index
    %c0_174 = arith.constant 0 : index
    %240 = vector.load %arg6[%c29, %c0_174] : memref<32x128xf32, #tpu.memory_space<vmem>>, vector<1x128xf32>
    tpu.vector_store %arg6[%c29, %c0_174], %239 {strides = array<i32>} : memref<32x128xf32, #tpu.memory_space<vmem>>, vector<1x128xf32>,
    %c3_i32_175 = arith.constant 3 : i32
    %241 = arith.addi %0, %c3_i32_175 : i32
    %242 = arith.index_cast %241 : i32 to index
    %c6_176 = arith.constant 6 : index
    %243 = memref.load %arg1[%242, %c6_176] : memref<8x8xi32, #tpu.memory_space<smem>>
    %c0_i32_177 = arith.constant 0 : i32
    %c31_i32_178 = arith.constant 31 : i32
    %244 = arith.maxsi %c0_i32_177, %243 : i32
    %245 = arith.minsi %c31_i32_178, %244 : i32
    %246 = arith.index_cast %245 : i32 to index
    %c0_179 = arith.constant 0 : index
    %247 = vector.load %arg3[%246, %c0_179] : memref<32x128xf32, #tpu.memory_space<vmem>>, vector<1x128xf32>
    %c30 = arith.constant 30 : index
    %c0_180 = arith.constant 0 : index
    %248 = vector.load %arg6[%c30, %c0_180] : memref<32x128xf32, #tpu.memory_space<vmem>>, vector<1x128xf32>
    tpu.vector_store %arg6[%c30, %c0_180], %247 {strides = array<i32>} : memref<32x128xf32, #tpu.memory_space<vmem>>, vector<1x128xf32>,
    %c3_i32_181 = arith.constant 3 : i32
    %249 = arith.addi %0, %c3_i32_181 : i32
    %250 = arith.index_cast %249 : i32 to index
    %c7_182 = arith.constant 7 : index
    %251 = memref.load %arg1[%250, %c7_182] : memref<8x8xi32, #tpu.memory_space<smem>>
    %c0_i32_183 = arith.constant 0 : i32
    %c31_i32_184 = arith.constant 31 : i32
    %252 = arith.maxsi %c0_i32_183, %251 : i32
    %253 = arith.minsi %c31_i32_184, %252 : i32
    %254 = arith.index_cast %253 : i32 to index
    %c0_185 = arith.constant 0 : index
    %255 = vector.load %arg3[%254, %c0_185] : memref<32x128xf32, #tpu.memory_space<vmem>>, vector<1x128xf32>
    %c31 = arith.constant 31 : index
    %c0_186 = arith.constant 0 : index
    %256 = vector.load %arg6[%c31, %c0_186] : memref<32x128xf32, #tpu.memory_space<vmem>>, vector<1x128xf32>
    tpu.vector_store %arg6[%c31, %c0_186], %255 {strides = array<i32>} : memref<32x128xf32, #tpu.memory_space<vmem>>, vector<1x128xf32>,
    %c0_187 = arith.constant 0 : index
    %c0_188 = arith.constant 0 : index
    %257 = vector.load %arg2[%c0_187, %c0_188] : memref<4x32xf32, #tpu.memory_space<vmem>>, vector<4x32xf32>
    %c0_189 = arith.constant 0 : index
    %c0_190 = arith.constant 0 : index
    %258 = vector.load %arg6[%c0_189, %c0_190] : memref<32x128xf32, #tpu.memory_space<vmem>>, vector<32x128xf32>
    %cst = arith.constant dense<0.000000e+00> : vector<4x128xf32>
    %259 = tpu.matmul %257, %258, %cst {dimension_numbers = #tpu.dot_dimension_numbers<[1], [0], [0], [1], [0, 0, 1, 1], [], []>, precision = #tpu.contract_precision<fp32>} : vector<4x32xf32>, vector<32x128xf32>, vector<4x128xf32> -> vector<4x128xf32>
    %260 = vector.extract_strided_slice %259 {offsets = [0, 0], sizes = [4, 2], strides = [1, 1]} : vector<4x128xf32> to vector<4x2xf32>
    %c0_191 = arith.constant 0 : index
    %c0_192 = arith.constant 0 : index
    %261 = vector.load %arg4[%c0_191, %c0_192] : memref<1x2xf32, #tpu.memory_space<vmem>>, vector<1x2xf32>
    %262 = vector.broadcast %261 : vector<1x2xf32> to vector<4x2xf32>
    %263 = arith.addf %260, %262 : vector<4x2xf32>
    %cst_193 = arith.constant dense<0xFF800000> : vector<4xf32>
    %264 = vector.multi_reduction <maximumf>, %263, %cst_193 [1] : vector<4x2xf32> to vector<4xf32>
    %265 = vector.shape_cast %264 : vector<4xf32> to vector<4x1xf32>
    %266 = vector.broadcast %265 : vector<4x1xf32> to vector<4x2xf32>
    %267 = arith.subf %263, %266 : vector<4x2xf32>
    %268 = math.exp %267 : vector<4x2xf32>
    %cst_194 = arith.constant dense<0.000000e+00> : vector<4xf32>
    %269 = vector.multi_reduction <add>, %268, %cst_194 [1] : vector<4x2xf32> to vector<4xf32>
    %270 = vector.shape_cast %269 : vector<4xf32> to vector<4x1xf32>
    %271 = vector.broadcast %270 : vector<4x1xf32> to vector<4x2xf32>
    %272 = arith.divf %268, %271 : vector<4x2xf32>
    %273 = vector.shape_cast %272 : vector<4x2xf32> to vector<4x1x2xf32>
    %c0_195 = arith.constant 0 : index
    %c0_196 = arith.constant 0 : index
    %c0_197 = arith.constant 0 : index
    %274 = vector.load %arg5[%c0_195, %c0_196, %c0_197] : memref<4x1x2xf32, #tpu.memory_space<vmem>>, vector<4x1x2xf32>
    tpu.vector_store %arg5[%c0_195, %c0_196, %c0_197], %273 {strides = array<i32>} : memref<4x1x2xf32, #tpu.memory_space<vmem>>, vector<4x1x2xf32>,
    return
  }
  func.func @transform_0(%arg0: i32, %arg1: memref<8x8xi32, #tpu.memory_space<smem>>) -> (i32, i32) {
    %c0_i32 = arith.constant 0 : i32
    %c0_i32_0 = arith.constant 0 : i32
    %c0_i32_1 = arith.constant 0 : i32
    return %c0_i32, %c0_i32_0 : i32, i32
  }
  func.func @transform_1(%arg0: i32, %arg1: memref<8x8xi32, #tpu.memory_space<smem>>) -> (i32, i32) {
    %c0_i32 = arith.constant 0 : i32
    %c0_i32_0 = arith.constant 0 : i32
    %c0_i32_1 = arith.constant 0 : i32
    return %c0_i32, %c0_i32_0 : i32, i32
  }
  func.func @transform_2(%arg0: i32, %arg1: memref<8x8xi32, #tpu.memory_space<smem>>) -> (i32, i32) {
    %c0_i32 = arith.constant 0 : i32
    %c0_i32_0 = arith.constant 0 : i32
    %c0_i32_1 = arith.constant 0 : i32
    return %c0_i32, %c0_i32_0 : i32, i32
  }
  func.func @transform_3(%arg0: i32, %arg1: memref<8x8xi32, #tpu.memory_space<smem>>) -> (i32, i32, i32) {
    %c0_i32 = arith.constant 0 : i32
    %c0_i32_0 = arith.constant 0 : i32
    %c0_i32_1 = arith.constant 0 : i32
    return %arg0, %c0_i32, %c0_i32_0 : i32, i32, i32
  }
}

</mosaic_0001>

<bundles_post_ra>
// kernel: tpu_custom_call.1
= control target key start
LH: loop header
LB: loop body
LE: loop exit
PB: predicated region body
PF: predicated region fallthrough
CT: control target
= control target key end

     0   :  { %s1579_s15 = smov [#allocation4]   ;;  %s1919_s0 = inlined_call_operand.hbm [shape: s32[8,8], index: 0, kind: input, shape index: {}]   ;;  %s1920_s1 = inlined_call_operand.hbm [shape: f32[4,32], index: 1, kind: input, shape index: {}]   ;;  %s1921_s2 = inlined_call_operand.hbm [shape: f32[32,128], index: 2, kind: input, shape index: {}]   ;;  %s1922_s3 = inlined_call_operand.vmem [shape: f32[1,2], index: 3, kind: input, shape index: {}]   ;;  %s1923_s4 = inlined_call_operand.vmem [shape: f32[8,1,2], index: 4, kind: output, shape index: {}]  }
   0x1   :  { %10 = dma.hbm_to_smem %s1919_s0, 128, %s1579_s15, [#allocation3] }
   0x2   :  { %1565 = dma.done.wait [#allocation3], 128 }
   0x3   :  { %1566 = vsyncadd [#allocation3], 4294967168 }
   0x4   :  { %12 = sfence }
   0x5   :  { %13 = vsyncpa [#allocation6], 0 }
   0x6   :  { %14 = vsyncpa [#allocation8], 0  ;;  %s1615_s18 = smov 0  }
   0x7 LB: > { %s1621_s19 = sadd.s32 4294967295, %s1577_s18   ;;  %p1117_p0 = scmp.ge.s32.totalorder %s1577_s18, 1  ;;  %s1577_s18 = sphi %s1615_s18, %s20_s18  }
   0x8   : > { %p114_p1 = scmp.lt.s32.totalorder %s1577_s18, 3  ;;  %p1924_p2 = scmp.eq.s32.totalorder %s1621_s19, 0 }
   0x9   : > { %s1580_s0 = smov [#allocation5]   ;;  %s1581_s22 = smov [#allocation7]  }
   0xa   : > { %s127_s20 = sshll.u32 %s1580_s0, 4  ;;  %p1626_p3 = pnand %p1117_p0, %p114_p1  ;;  %s128_s20 = int_to_ptr.vmem [resolvable:$true] %s127_s20 }
   0xb   : > { %s137_s23 = sshll.u32 %s1581_s22, 4  ;;  %s1520_s25 = scalar_lea.vmem %s128_s20, 64  ;;  %s138_s23 = int_to_ptr.vmem [resolvable:$true] %s137_s23 }
   0xc   : > { %s1926_s21 = scalar_select %p1626_p3, 1, 0 }
   0xd   : > { %p1470_p4 = pneg %p1626_p3  ;;  %p1521_p7 = scmp.ne.s32.totalorder %s128_s20, %s1520_s25 }
   0xe   : > { %p1528_p10 = scmp.lt.s32.totalorder %s128_s20, %s128_s20  ;;  %p1529_p11 = scmp.lt.s32.totalorder %s1520_s25, %s1520_s25 }
   0xf   : > { %p1634_p5 = pnand %p1924_p2, %p1470_p4 }
  0x10   : > { %p1530_p12 = por %p1529_p11, %p1528_p10 }
  0x11   : > { %p1511_p6 = pneg %p1634_p5 }
  0x13   : > { %p1523_p8 = pnand %p1521_p7, %p1511_p6 }
  0x15   : > { %p1524_p9 = pneg %p1523_p8 }
  0x17   : > { %p1531_p13 = pnand %p1530_p12, %p1524_p9 }
  0x19   : > { %1534 = shalt.err (!%p1531_p13)
}
  0x1a   : > { %1473 = dma.hbm_to_vmem [thread:$0]  (!%p1634_p5), %s1920_s1, 64, %s128_s20, [#allocation6]  }
  0x1b   : > { %s1546_s28 = scalar_lea.vmem %s138_s23, 512  ;;  %p1554_p7 = scmp.lt.s32.totalorder %s138_s23, %s138_s23 }
  0x1c   : > { %p1547_p0 = scmp.ne.s32.totalorder %s138_s23, %s1546_s28  ;;  %p1555_p8 = scmp.lt.s32.totalorder %s1546_s28, %s1546_s28 }
  0x1e   : > { %p1549_p1 = pnand %p1547_p0, %p1511_p6  ;;  %p1556_p2 = por %p1555_p8, %p1554_p7 }
  0x20   : > { %p1550_p4 = pneg %p1549_p1 }
  0x22   : > { %p1557_p3 = pnand %p1556_p2, %p1550_p4 }
  0x24   : > { %1560 = shalt.err (!%p1557_p3)
}
  0x25   : > { %s1582_s29 = smov 128   ;;  %s1583_s30 = smov 8  }
  0x26   : > { %1476 = dma.hbm_to_vmem [thread:$0]  (!%p1634_p5), %s1921_s2, 512, %s138_s23, [#allocation8], %s1582_s29, %s1582_s29, %s1583_s30  }
  0x27   : > { %p1928_p9 = scmp.ne.s32.totalorder %s1926_s21, 0 }
  0x28   : > { %p1929_p10 = scmp.eq.s32.totalorder (!%p1928_p9), %s1621_s19, 0 }
  0x29   : > { %156 = sbr.rel (%p1928_p9) target bundleno = 727 (0x2d7), region = 32 }
  0x2e   : > { %1568 = dma.done.wait (%p1929_p10), [#allocation6], 64   ;;  %p1930_p6 = pmov %p1929_p10 }
  0x30   : > { %1570 = vsyncadd (%p1930_p6), [#allocation6], 4294967232  ;;  %p1931_p2 = pmov %p1930_p6 }
  0x32   : > { %1572 = dma.done.wait (%p1931_p2), [#allocation8], 512   ;;  %p1932_p3 = pmov %p1931_p2 }
  0x33   : > { %s1667_s7 = sshll.u32 %s1621_s19, 9  ;;  %v1584_v0 = vmov 0.0   ;;  %vm1585_vm0 = vmmov 0   ;;  %v475_v47 = vld [vmem:[#allocation5] sm:$0xf]  ;;  %vm480_vm1 = vcmask 261120  }
  0x34   : > { %1574 = vsyncadd (%p1932_p3), [#allocation8], 4294966784  ;;  %1396 = vmatprep.subr.mxu0 %v1584_v0  ;;  %s1671_s8 = sadd.s32 384, %s1667_s7  ;;  %s1674_s9 = sadd.s32 256, %s1667_s7  ;;  %1407 = vmatprep.subr.mxu1 %v1584_v0  ;;  %v482_v48 = vsel %vm480_vm1, %v475_v47, 0  ;;  %vm977_vm2 = vcmask 11264  }
  0x35   : > { %s404_s10 = sld [smem:[#allocation4 + %s1671_s8]]  ;;  %s412_s11 = sadd.s32 1, %s1671_s8  ;;  %1404 = vmatprep.mubr.msk.f32.mxu0 %vm1585_vm0, %v1584_v0  ;;  %1415 = vmatprep.mubr.msk.f32.mxu1 %vm1585_vm0, %v1584_v0  ;;  %v1861_v50 = vand.u32 4294901760, %v482_v48  ;;  %vm1018_vm3 = vcmask 8192  }
  0x36   : > { %s413_s12 = sld [smem:[#allocation4 + %s412_s11]]  ;;  %s421_s13 = sadd.s32 2, %s1671_s8 }
  0x37   : > { %s422_s14 = sld [smem:[#allocation4 + %s421_s13]]  ;;  %s430_s15 = sadd.s32 3, %s1671_s8  ;;  %v554_v52 = vsub.f32 %v482_v48, %v1861_v50 }
  0x38   : > { %s1681_s16 = sld [smem:[#allocation4 + %s430_s15]]  ;;  %s439_s17 = sadd.s32 4, %s1671_s8 }
  0x39   : > { %s1684_s0 = sld [smem:[#allocation4 + %s439_s17]]  ;;  %s448_s20 = sadd.s32 5, %s1671_s8  ;;  %v555_v55 = vand.u32 4294901760, %v554_v52 }
  0x3a   : > { %s1687_s21 = sld [smem:[#allocation4 + %s448_s20]]  ;;  %s457_s22 = sadd.s32 6, %s1671_s8 }
  0x3b   : > { %p405_p5 = scmp.gt.s32.totalorder %s404_s10, 0  ;;  %p1249_p11 = scmp.lt.s32.totalorder %s404_s10, 31  ;;  %v556_v56 = vsub.f32 %v554_v52, %v555_v55 }
  0x3c   : > { %p414_p12 = scmp.gt.s32.totalorder %s413_s12, 0  ;;  %p1254_p13 = scmp.lt.s32.totalorder %s413_s12, 31 }
  0x3d   : > { %s1934_s10 = smov (!%p405_p5, %s404_s10), 0  ;;  %p423_p0 = scmp.gt.s32.totalorder %s422_s14, 0  ;;  %v557_v58 = vand.u32 4294901760, %v556_v56 }
  0x3e   : > { %s1936_s12 = smov (!%p414_p12, %s413_s12), 0  ;;  %s1938_s10 = smov (!%p1249_p11, %s1934_s10), 31 }
  0x3f   : > { %s1940_s12 = smov (!%p1254_p13, %s1936_s12), 31  ;;  %s409_s23 = scalar_lea.vmem [#allocation7], %s1938_s10 }
  0x40   : > { %v410_v1 = vld [vmem:[%s409_s23] sm:$0x1]  ;;  %p1259_p1 = scmp.lt.s32.totalorder %s422_s14, 31  ;;  %s418_s24 = scalar_lea.vmem [#allocation7], %s1940_s12 }
  0x41   : > { %411 = vst [vmem:[#allocation2 + $0x18] sm:$0x1] %v410_v1  ;;  %v419_v2 = vld [vmem:[%s418_s24] sm:$0x1]  ;;  %s1942_s14 = smov (!%p423_p0, %s422_s14), 0  ;;  %p432_p4 = scmp.gt.s32.totalorder %s1681_s16, 0 }
  0x42   : > { %420 = vst [vmem:[#allocation2 + $0x19] sm:$0x1] %v419_v2  ;;  %p1264_p7 = scmp.lt.s32.totalorder %s1681_s16, 31  ;;  %s1944_s14 = smov (!%p1259_p1, %s1942_s14), 31 }
  0x43   : > { %s1946_s16 = smov (!%p432_p4, %s1681_s16), 0  ;;  %p441_p8 = scmp.gt.s32.totalorder %s1684_s0, 0 }
  0x44   : > { %s427_s25 = scalar_lea.vmem [#allocation7], %s1944_s14  ;;  %s1948_s16 = smov (!%p1264_p7, %s1946_s16), 31 }
  0x45   : > { %v428_v3 = vld [vmem:[%s427_s25] sm:$0x1]  ;;  %s442_s26 = scalar_select %p441_p8, %s1684_s0, 0 }
  0x46   : > { %429 = vst [vmem:[#allocation2 + $0x1a] sm:$0x1] %v428_v3  ;;  %p1269_p9 = scmp.lt.s32.totalorder %s1684_s0, 31  ;;  %s436_s27 = scalar_lea.vmem [#allocation7], %s1948_s16 }
  0x47   : > { %v437_v4 = vld [vmem:[%s436_s27] sm:$0x1]  ;;  %p450_p10 = scmp.gt.s32.totalorder %s1687_s21, 0  ;;  %p1274_p6 = scmp.lt.s32.totalorder %s1687_s21, 31 }
  0x48   : > { %438 = vst [vmem:[#allocation2 + $0x1b] sm:$0x1] %v437_v4  ;;  %s1950_s26 = smov (!%p1269_p9, %s442_s26), 31  ;;  %s458_s28 = sld [smem:[#allocation4 + %s457_s22]] }
  0x49   : > { %s1952_s21 = smov (!%p450_p10, %s1687_s21), 0  ;;  %s445_s29 = scalar_lea.vmem [#allocation7], %s1950_s26 }
  0x4a   : > { %v446_v5 = vld [vmem:[%s445_s29] sm:$0x1]  ;;  %s1954_s21 = smov (!%p1274_p6, %s1952_s21), 31  ;;  %s466_s30 = sadd.s32 7, %s1671_s8 }
  0x4b   : > { %447 = vst [vmem:[#allocation2 + $0x1c] sm:$0x1] %v446_v5  ;;  %s1703_s5 = sld [smem:[#allocation4 + %s1674_s9]]  ;;  %s454_s10 = scalar_lea.vmem [#allocation7], %s1954_s21 }
  0x4c   : > { %s467_s6 = sld [smem:[#allocation4 + %s466_s30]]  ;;  %v455_v6 = vld [vmem:[%s454_s10] sm:$0x1]  ;;  %s339_s11 = sadd.s32 1, %s1674_s9 }
  0x4d   : > { %s348_s12 = sadd.s32 2, %s1674_s9  ;;  %456 = vst [vmem:[#allocation2 + $0x1d] sm:$0x1] %v455_v6  ;;  %s1707_s13 = sld [smem:[#allocation4 + %s339_s11]] }
  0x4e   : > { %s357_s14 = sadd.s32 3, %s1674_s9  ;;  %p459_p2 = scmp.gt.s32.totalorder %s458_s28, 0 }
  0x4f   : > { %p1279_p3 = scmp.lt.s32.totalorder %s458_s28, 31  ;;  %s1714_s8 = sld [smem:[#allocation4 + %s348_s12]] }
  0x50   : > { %s366_s15 = sadd.s32 4, %s1674_s9  ;;  %s1956_s28 = smov (!%p459_p2, %s458_s28), 0 }
  0x51   : > { %s1958_s28 = smov (!%p1279_p3, %s1956_s28), 31  ;;  %p332_p12 = scmp.gt.s32.totalorder %s1703_s5, 0 }
  0x52   : > { %p468_p5 = scmp.gt.s32.totalorder %s467_s6, 0  ;;  %p1284_p11 = scmp.lt.s32.totalorder %s467_s6, 31 }
  0x53   : > { %s463_s16 = scalar_lea.vmem [#allocation7], %s1958_s28  ;;  %p1208_p13 = scmp.lt.s32.totalorder %s1703_s5, 31 }
  0x54   : > { %s1960_s6 = smov (!%p468_p5, %s467_s6), 0  ;;  %v464_v7 = vld [vmem:[%s463_s16] sm:$0x1]  ;;  %p341_p0 = scmp.gt.s32.totalorder %s1707_s13, 0 }
  0x55   : > { %s1962_s6 = smov (!%p1284_p11, %s1960_s6), 31  ;;  %465 = vst [vmem:[#allocation2 + $0x1e] sm:$0x1] %v464_v7  ;;  %p1213_p1 = scmp.lt.s32.totalorder %s1707_s13, 31 }
  0x56   : > { %s333_s17 = scalar_select %p332_p12, %s1703_s5, 0 }
  0x57   : > { %s472_s0 = scalar_lea.vmem [#allocation7], %s1962_s6  ;;  %s1966_s13 = smov (!%p341_p0, %s1707_s13), 0 }
  0x58   : > { %v473_v8 = vld [vmem:[%s472_s0] sm:$0x1]  ;;  %s1964_s17 = smov (!%p1208_p13, %s333_s17), 31  ;;  %p350_p4 = scmp.gt.s32.totalorder %s1714_s8, 0 }
  0x59   : > { %474 = vst [vmem:[#allocation2 + $0x1f] sm:$0x1] %v473_v8  ;;  %s336_s20 = scalar_lea.vmem [#allocation7], %s1964_s17  ;;  %s1968_s13 = smov (!%p1213_p1, %s1966_s13), 31 }
  0x5a   : > { %v337_v9 = vld [vmem:[%s336_s20] sm:$0x1]  ;;  %s351_s21 = scalar_select %p350_p4, %s1714_s8, 0 }
  0x5b   : > { %338 = vst [vmem:[#allocation2 + $0x10] sm:$0x1] %v337_v9  ;;  %p1218_p7 = scmp.lt.s32.totalorder %s1714_s8, 31  ;;  %s345_s22 = scalar_lea.vmem [#allocation7], %s1968_s13 }
  0x5c   : > { %v346_v10 = vld [vmem:[%s345_s22] sm:$0x1]  ;;  %s358_s23 = sld [smem:[#allocation4 + %s357_s14]]  ;;  %s375_s24 = sadd.s32 5, %s1674_s9 }
  0x5d   : > { %347 = vst [vmem:[#allocation2 + $0x11] sm:$0x1] %v346_v10  ;;  %s1970_s21 = smov (!%p1218_p7, %s351_s21), 31  ;;  %s1733_s25 = sld [smem:[#allocation4 + %s366_s15]] }
  0x5e   : > { %s384_s26 = sadd.s32 6, %s1674_s9  ;;  %s1736_s27 = sld [smem:[#allocation4 + %s375_s24]] }
  0x5f   : > { %s354_s28 = scalar_lea.vmem [#allocation7], %s1970_s21  ;;  %s1739_s29 = sld [smem:[#allocation4 + %s384_s26]] }
  0x60   : > { %v479_v11 = vld [vmem:[#allocation2 + $0x18] sm:$0xff]  ;;  %v355_v13 = vld [vmem:[%s354_s28] sm:$0x1]  ;;  %s393_s30 = sadd.s32 7, %s1674_s9  ;;  %s1749_s6 = sadd.s32 128, %s1667_s7 }
  0x61   : > { %v1729_v12 = vand.u32 4294901760, %v479_v11  ;;  %356 = vst [vmem:[#allocation2 + $0x12] sm:$0x1] %v355_v13  ;;  %s1746_s5 = sld [smem:[#allocation4 + %s393_s30]]  ;;  %s266_s9 = sadd.s32 1, %s1749_s6 }
  0x62   : > { %p359_p8 = scmp.gt.s32.totalorder %s358_s23, 0  ;;  %p1223_p9 = scmp.lt.s32.totalorder %s358_s23, 31 }
  0x63   : > { %1397 = vmatpush3.msra.mxu0 %v1729_v12  ;;  %v1743_v14 = vsub.f32 %v479_v11, %v1729_v12  ;;  %s1753_s10 = sld [smem:[#allocation4 + %s1749_s6]]  ;;  %p368_p10 = scmp.gt.s32.totalorder %s1733_s25, 0 }
  0x64   : > { %1398 = vmatprep.subr.mxu0 %v1584_v0  ;;  %s1972_s23 = smov (!%p359_p8, %s358_s23), 0  ;;  %p1228_p6 = scmp.lt.s32.totalorder %s1733_s25, 31 }
  0x65   : > { %v590_v15 = vand.u32 4294901760, %v1743_v14  ;;  %s1974_s23 = smov (!%p1223_p9, %s1972_s23), 31  ;;  %s1976_s25 = smov (!%p368_p10, %s1733_s25), 0 }
  0x66   : > { %p377_p2 = scmp.gt.s32.totalorder %s1736_s27, 0  ;;  %s363_s11 = scalar_lea.vmem [#allocation7], %s1974_s23 }
  0x67   : > { %v591_v16 = vsub.f32 %v1743_v14, %v590_v15  ;;  %v364_v18 = vld [vmem:[%s363_s11] sm:$0x1]  ;;  %s1978_s25 = smov (!%p1228_p6, %s1976_s25), 31  ;;  %p1233_p3 = scmp.lt.s32.totalorder %s1736_s27, 31 }
  0x68   : > { %365 = vst [vmem:[#allocation2 + $0x13] sm:$0x1] %v364_v18  ;;  %s378_s12 = scalar_select %p377_p2, %s1736_s27, 0 }
  0x69   : > { %v592_v17 = vand.u32 4294901760, %v591_v16  ;;  %s372_s13 = scalar_lea.vmem [#allocation7], %s1978_s25  ;;  %p386_p5 = scmp.gt.s32.totalorder %s1739_s29, 0 }
  0x6a   : > { %v373_v19 = vld [vmem:[%s372_s13] sm:$0x1]  ;;  %p1238_p11 = scmp.lt.s32.totalorder %s1739_s29, 31  ;;  %s1980_s12 = smov (!%p1233_p3, %s378_s12), 31 }
  0x6b   : > { %1408 = vmatpush3.msra.mxu1 %v592_v17  ;;  %374 = vst [vmem:[#allocation2 + $0x14] sm:$0x1] %v373_v19  ;;  %s1982_s29 = smov (!%p386_p5, %s1739_s29), 0  ;;  %p395_p12 = scmp.gt.s32.totalorder %s1746_s5, 0 }
  0x6c   : > { %1409 = vmatprep.subr.mxu1 %v1584_v0  ;;  %s381_s14 = scalar_lea.vmem [#allocation7], %s1980_s12  ;;  %s1984_s29 = smov (!%p1238_p11, %s1982_s29), 31 }
  0x6d   : > { %v382_v20 = vld [vmem:[%s381_s14] sm:$0x1]  ;;  %s396_s8 = scalar_select %p395_p12, %s1746_s5, 0 }
  0x6e   : > { %383 = vst [vmem:[#allocation2 + $0x15] sm:$0x1] %v382_v20  ;;  %p1243_p13 = scmp.lt.s32.totalorder %s1746_s5, 31  ;;  %s390_s15 = scalar_lea.vmem [#allocation7], %s1984_s29 }
  0x6f   : > { %v391_v21 = vld [vmem:[%s390_s15] sm:$0x1]  ;;  %p259_p0 = scmp.gt.s32.totalorder %s1753_s10, 0  ;;  %p1167_p1 = scmp.lt.s32.totalorder %s1753_s10, 31 }
  0x70   : > { %392 = vst [vmem:[#allocation2 + $0x16] sm:$0x1] %v391_v21  ;;  %s1986_s8 = smov (!%p1243_p13, %s396_s8), 31  ;;  %s267_s16 = sld [smem:[#allocation4 + %s266_s9]] }
  0x71   : > { %s1988_s10 = smov (!%p259_p0, %s1753_s10), 0  ;;  %s399_s17 = scalar_lea.vmem [#allocation7], %s1986_s8 }
  0x72   : > { %v400_v22 = vld [vmem:[%s399_s17] sm:$0x1]  ;;  %s1990_s10 = smov (!%p1167_p1, %s1988_s10), 31  ;;  %s275_s0 = sadd.s32 2, %s1749_s6 }
  0x73   : > { %401 = vst [vmem:[#allocation2 + $0x17] sm:$0x1] %v400_v22  ;;  %s284_s20 = sadd.s32 3, %s1749_s6  ;;  %s276_s21 = sld [smem:[#allocation4 + %s275_s0]] }
  0x74   : > { %s263_s22 = scalar_lea.vmem [#allocation7], %s1990_s10  ;;  %s1779_s23 = sld [smem:[#allocation4 + %s284_s20]] }
  0x75   : > { %v264_v23 = vld [vmem:[%s263_s22] sm:$0x1]  ;;  %s293_s24 = sadd.s32 4, %s1749_s6  ;;  %s302_s26 = sadd.s32 5, %s1749_s6 }
  0x76   : > { %265 = vst [vmem:[#allocation2 + $0x8] sm:$0x1] %v264_v23  ;;  %s1782_s25 = sld [smem:[#allocation4 + %s293_s24]]  ;;  %p268_p4 = scmp.gt.s32.totalorder %s267_s16, 0 }
  0x77   : > { %p1172_p7 = scmp.lt.s32.totalorder %s267_s16, 31  ;;  %s1785_s27 = sld [smem:[#allocation4 + %s302_s26]] }
  0x78   : > { %s311_s28 = sadd.s32 6, %s1749_s6  ;;  %s1992_s16 = smov (!%p268_p4, %s267_s16), 0 }
  0x79   : > { %p277_p8 = scmp.gt.s32.totalorder %s276_s21, 0  ;;  %p1177_p9 = scmp.lt.s32.totalorder %s276_s21, 31 }
  0x7a   : > { %v478_v24 = vld [vmem:[#allocation2 + $0x10] sm:$0xff]  ;;  %s1994_s16 = smov (!%p1172_p7, %s1992_s16), 31  ;;  %p286_p10 = scmp.gt.s32.totalorder %s1779_s23, 0 }
  0x7b   : > { %v1788_v25 = vand.u32 4294901760, %v478_v24  ;;  %s1996_s21 = smov (!%p277_p8, %s276_s21), 0  ;;  %s272_s29 = scalar_lea.vmem [#allocation7], %s1994_s16 }
  0x7c   : > { %v273_v27 = vld [vmem:[%s272_s29] sm:$0x1]  ;;  %s1998_s21 = smov (!%p1177_p9, %s1996_s21), 31  ;;  %p1182_p6 = scmp.lt.s32.totalorder %s1779_s23, 31 }
  0x7d   : > { %1399 = vmatpush3.msra.mxu0 %v1788_v25  ;;  %v1793_v26 = vsub.f32 %v478_v24, %v1788_v25  ;;  %274 = vst [vmem:[#allocation2 + $0x9] sm:$0x1] %v273_v27  ;;  %s287_s30 = scalar_select %p286_p10, %s1779_s23, 0 }
  0x7e   : > { %1400 = vmatprep.subr.mxu0 %v1584_v0  ;;  %s281_s5 = scalar_lea.vmem [#allocation7], %s1998_s21  ;;  %p295_p2 = scmp.gt.s32.totalorder %s1782_s25, 0 }
  0x7f   : > { %v597_v28 = vand.u32 4294901760, %v1793_v26  ;;  %v282_v29 = vld [vmem:[%s281_s5] sm:$0x1]  ;;  %p1187_p3 = scmp.lt.s32.totalorder %s1782_s25, 31  ;;  %s2000_s30 = smov (!%p1182_p6, %s287_s30), 31 }
  0x80   : > { %283 = vst [vmem:[#allocation2 + $0xa] sm:$0x1] %v282_v29  ;;  %s2002_s25 = smov (!%p295_p2, %s1782_s25), 0  ;;  %p304_p5 = scmp.gt.s32.totalorder %s1785_s27, 0 }
  0x81   : > { %v598_v30 = vsub.f32 %v1793_v26, %v597_v28  ;;  %s290_s10 = scalar_lea.vmem [#allocation7], %s2000_s30  ;;  %s2004_s25 = smov (!%p1187_p3, %s2002_s25), 31 }
  0x82   : > { %v291_v32 = vld [vmem:[%s290_s10] sm:$0x1]  ;;  %s305_s9 = scalar_select %p304_p5, %s1785_s27, 0 }
  0x83   : > { %v599_v31 = vand.u32 4294901760, %v598_v30  ;;  %292 = vst [vmem:[#allocation2 + $0xb] sm:$0x1] %v291_v32  ;;  %p1192_p11 = scmp.lt.s32.totalorder %s1785_s27, 31  ;;  %s299_s11 = scalar_lea.vmem [#allocation7], %s2004_s25 }
  0x84   : > { %v300_v33 = vld [vmem:[%s299_s11] sm:$0x1]  ;;  %s312_s12 = sld [smem:[#allocation4 + %s311_s28]]  ;;  %s320_s13 = sadd.s32 7, %s1749_s6 }
  0x85   : > { %1410 = vmatpush3.msra.mxu1 %v599_v31  ;;  %301 = vst [vmem:[#allocation2 + $0xc] sm:$0x1] %v300_v33  ;;  %s2006_s9 = smov (!%p1192_p11, %s305_s9), 31  ;;  %s321_s14 = sld [smem:[#allocation4 + %s320_s13]] }
  0x86   : > { %1411 = vmatprep.subr.mxu1 %v1584_v0  ;;  %s193_s8 = sadd.s32 1, %s1667_s7  ;;  %s1814_s15 = sld [smem:[#allocation4 + %s1667_s7]] }
  0x87   : > { %s308_s16 = scalar_lea.vmem [#allocation7], %s2006_s9  ;;  %s1816_s17 = sld [smem:[#allocation4 + %s193_s8]] }
  0x88   : > { %v309_v34 = vld [vmem:[%s308_s16] sm:$0x1]  ;;  %s202_s0 = sadd.s32 2, %s1667_s7  ;;  %s211_s21 = sadd.s32 3, %s1667_s7 }
  0x89   : > { %310 = vst [vmem:[#allocation2 + $0xd] sm:$0x1] %v309_v34  ;;  %s1819_s20 = sld [smem:[#allocation4 + %s202_s0]]  ;;  %s220_s22 = sadd.s32 4, %s1667_s7 }
  0x8a   : > { %p313_p12 = scmp.gt.s32.totalorder %s312_s12, 0  ;;  %p1197_p13 = scmp.lt.s32.totalorder %s312_s12, 31 }
  0x8b   : > { %s1822_s6 = sld [smem:[#allocation4 + %s211_s21]]  ;;  %p322_p0 = scmp.gt.s32.totalorder %s321_s14, 0 }
  0x8c   : > { %s2008_s12 = smov (!%p313_p12, %s312_s12), 0  ;;  %p1202_p1 = scmp.lt.s32.totalorder %s321_s14, 31 }
  0x8d   : > { %s2010_s12 = smov (!%p1197_p13, %s2008_s12), 31  ;;  %s2012_s14 = smov (!%p322_p0, %s321_s14), 0 }
  0x8e   : > { %p186_p4 = scmp.gt.s32.totalorder %s1814_s15, 0  ;;  %s317_s23 = scalar_lea.vmem [#allocation7], %s2010_s12 }
  0x8f   : > { %v318_v35 = vld [vmem:[%s317_s23] sm:$0x1]  ;;  %s2014_s14 = smov (!%p1202_p1, %s2012_s14), 31  ;;  %p1126_p7 = scmp.lt.s32.totalorder %s1814_s15, 31 }
  0x90   : > { %319 = vst [vmem:[#allocation2 + $0xe] sm:$0x1] %v318_v35  ;;  %s187_s24 = scalar_select %p186_p4, %s1814_s15, 0 }
  0x91   : > { %s326_s25 = scalar_lea.vmem [#allocation7], %s2014_s14  ;;  %p195_p8 = scmp.gt.s32.totalorder %s1816_s17, 0 }
  0x92   : > { %v327_v36 = vld [vmem:[%s326_s25] sm:$0x1]  ;;  %p1131_p9 = scmp.lt.s32.totalorder %s1816_s17, 31  ;;  %s2016_s24 = smov (!%p1126_p7, %s187_s24), 31 }
  0x93   : > { %328 = vst [vmem:[#allocation2 + $0xf] sm:$0x1] %v327_v36  ;;  %s2018_s17 = smov (!%p195_p8, %s1816_s17), 0  ;;  %p204_p10 = scmp.gt.s32.totalorder %s1819_s20, 0 }
  0x94   : > { %s190_s26 = scalar_lea.vmem [#allocation7], %s2016_s24  ;;  %s2020_s17 = smov (!%p1131_p9, %s2018_s17), 31 }
  0x95   : > { %v191_v37 = vld [vmem:[%s190_s26] sm:$0x1]  ;;  %s205_s27 = scalar_select %p204_p10, %s1819_s20, 0 }
  0x96   : > { %192 = vst [vmem:[#allocation2] sm:$0x1] %v191_v37  ;;  %p1136_p6 = scmp.lt.s32.totalorder %s1819_s20, 31  ;;  %s199_s28 = scalar_lea.vmem [#allocation7], %s2020_s17 }
  0x97   : > { %v200_v38 = vld [vmem:[%s199_s28] sm:$0x1]  ;;  %p213_p2 = scmp.gt.s32.totalorder %s1822_s6, 0  ;;  %p1141_p3 = scmp.lt.s32.totalorder %s1822_s6, 31 }
  0x98   : > { %201 = vst [vmem:[#allocation2 + $0x1] sm:$0x1] %v200_v38  ;;  %s2022_s27 = smov (!%p1136_p6, %s205_s27), 31  ;;  %s221_s29 = sld [smem:[#allocation4 + %s220_s22]] }
  0x99   : > { %s2024_s6 = smov (!%p213_p2, %s1822_s6), 0  ;;  %s208_s30 = scalar_lea.vmem [#allocation7], %s2022_s27 }
  0x9a   : > { %v477_v39 = vld [vmem:[#allocation2 + $0x8] sm:$0xff]  ;;  %v209_v41 = vld [vmem:[%s208_s30] sm:$0x1]  ;;  %s2026_s6 = smov (!%p1141_p3, %s2024_s6), 31  ;;  %s229_s5 = sadd.s32 5, %s1667_s7 }
  0x9b   : > { %v1836_v40 = vand.u32 4294901760, %v477_v39  ;;  %210 = vst [vmem:[#allocation2 + $0x2] sm:$0x1] %v209_v41  ;;  %s238_s10 = sadd.s32 6, %s1667_s7  ;;  %s230_s9 = sld [smem:[#allocation4 + %s229_s5]] }
  0x9c   : > { %s217_s11 = scalar_lea.vmem [#allocation7], %s2026_s6  ;;  %s1849_s12 = sld [smem:[#allocation4 + %s238_s10]] }
  0x9d   : > { %1401 = vmatpush3.msra.mxu0 %v1836_v40  ;;  %v1843_v42 = vsub.f32 %v477_v39, %v1836_v40  ;;  %v218_v44 = vld [vmem:[%s217_s11] sm:$0x1]  ;;  %s247_s13 = sadd.s32 7, %s1667_s7  ;;  %s1123_s21 = sshll.u32 %s1621_s19, 2 }
  0x9e   : > { %1402 = vmatprep.subr.mxu0 %v1584_v0  ;;  %219 = vst [vmem:[#allocation2 + $0x3] sm:$0x1] %v218_v44  ;;  %p222_p5 = scmp.gt.s32.totalorder %s221_s29, 0  ;;  %p1146_p11 = scmp.lt.s32.totalorder %s221_s29, 31 }
  0x9f   : > { %v604_v43 = vand.u32 4294901760, %v1843_v42  ;;  %s1855_s14 = sld [smem:[#allocation4 + %s247_s13]]  ;;  %p179_p8 = scmp.lt.s32.totalorder %s1123_s21, 7 }
  0xa0   : > { %s2028_s29 = smov (!%p222_p5, %s221_s29), 0 }
  0xa1   : > { %v605_v45 = vsub.f32 %v1843_v42, %v604_v43  ;;  %p231_p12 = scmp.gt.s32.totalorder %s230_s9, 0  ;;  %p1151_p13 = scmp.lt.s32.totalorder %s230_s9, 31 }
  0xa2   : > { %s2030_s29 = smov (!%p1146_p11, %s2028_s29), 31  ;;  %p240_p0 = scmp.gt.s32.totalorder %s1849_s12, 0 }
  0xa3   : > { %v606_v46 = vand.u32 4294901760, %v605_v45  ;;  %s2032_s9 = smov (!%p231_p12, %s230_s9), 0  ;;  %s226_s7 = scalar_lea.vmem [#allocation7], %s2030_s29 }
  0xa4   : > { %v227_v49 = vld [vmem:[%s226_s7] sm:$0x1]  ;;  %s2034_s9 = smov (!%p1151_p13, %s2032_s9), 31  ;;  %p1156_p1 = scmp.lt.s32.totalorder %s1849_s12, 31 }
  0xa5   : > { %1412 = vmatpush3.msra.mxu1 %v606_v46  ;;  %228 = vst [vmem:[#allocation2 + $0x4] sm:$0x1] %v227_v49  ;;  %s241_s8 = scalar_select %p240_p0, %s1849_s12, 0 }
  0xa6   : > { %1413 = vmatprep.subr.mxu1 %v1584_v0  ;;  %s235_s15 = scalar_lea.vmem [#allocation7], %s2034_s9  ;;  %p249_p4 = scmp.gt.s32.totalorder %s1855_s14, 0 }
  0xa7   : > { %v236_v51 = vld [vmem:[%s235_s15] sm:$0x1]  ;;  %p1161_p7 = scmp.lt.s32.totalorder %s1855_s14, 31  ;;  %s2036_s8 = smov (!%p1156_p1, %s241_s8), 31 }
  0xa8   : > { %237 = vst [vmem:[#allocation2 + $0x5] sm:$0x1] %v236_v51  ;;  %s2038_s14 = smov (!%p249_p4, %s1855_s14), 0  ;;  %s244_s16 = scalar_lea.vmem [#allocation7], %s2036_s8 }
  0xa9   : > { %v245_v53 = vld [vmem:[%s244_s16] sm:$0x1]  ;;  %s2040_s14 = smov (!%p1161_p7, %s2038_s14), 31  ;;  %s2042_s21 = smov (!%p179_p8, %s1123_s21), 7 }
  0xaa   : > { %246 = vst [vmem:[#allocation2 + $0x6] sm:$0x1] %v245_v53  ;;  %s253_s17 = scalar_lea.vmem [#allocation7], %s2040_s14  ;;  %s181_s23 = scalar_lea.vmem %s1923_s4, %s2042_s21 }
  0xab   : > { %v254_v54 = vld [vmem:[%s253_s17] sm:$0x1] }
  0xac   : > { %255 = vst [vmem:[#allocation2 + $0x7] sm:$0x1] %v254_v54 }
  0xb3   : > { %v476_v57 = vld [vmem:[#allocation2] sm:$0xff] }
  0xb4   : > { %v518_v59 = vand.u32 4294901760, %v476_v57 }
  0xb6   : > { %1403 = vmatpush3.msra.mxu0 %v518_v59  ;;  %v610_v60 = vsub.f32 %v476_v57, %v518_v59 }
  0xb7   : > { %1418 = vmatprep.subr.mxu0 %v1584_v0  ;;  %1405 = vmatmul.mubr.f32.vlgmr.msra.gmra.mxu0 %v557_v58 }
  0xb8   : > { %1419 = vmatpush3.msra.mxu0 %v1743_v14  ;;  %v611_v61 = vand.u32 4294901760, %v610_v60  ;;  %1426 = vmatprep.mubr.msk.f32.mxu0 %vm1585_vm0, %v1584_v0 }
  0xb9   : > { %1420 = vmatprep.subr.mxu0 %v1584_v0 }
  0xba   : > { %1421 = vmatpush3.msra.mxu0 %v1793_v26  ;;  %v612_v62 = vsub.f32 %v610_v60, %v611_v61  ;;  %v1586_v26 = vmov 1966171168  }
  0xbb   : > { %1422 = vmatprep.subr.mxu0 %v1584_v0  ;;  %v991_v27 = vunpack.c.l.s4 %v1586_v26 }
  0xbc   : > { %v613_v63 = vand.u32 4294901760, %v612_v62  ;;  %1423 = vmatpush3.msra.mxu0 %v1843_v42 }
  0xbd   : > { %1424 = vmatprep.subr.mxu0 %v1584_v0  ;;  %v992_v29 = vunpack.c.0.s8 %v991_v27 }
  0xbe   : > { %1414 = vmatpush3.msra.mxu1 %v613_v63  ;;  %1425 = vmatpush3.msra.mxu0 %v610_v60 }
  0xbf   : > { %1416 = vmatmul.mubr.f32.vlgmr.msra.gmra.mxu1 %v1861_v50  ;;  %1429 = vmatprep.subr.mxu1 %v1584_v0 }
  0xc0   : > { %1430 = vmatpush3.msra.mxu1 %v1729_v12  ;;  %1427 = vmatmul.mubr.f32.vlgmr.msra.gmra.mxu0 %v554_v52 }
  0xc1   : > { %1431 = vmatprep.subr.mxu1 %v1584_v0  ;;  %1440 = vmatprep.subr.mxu0 %v1584_v0 }
  0xc2   : > { %1432 = vmatpush3.msra.mxu1 %v1788_v25  ;;  %1441 = vmatpush3.msra.mxu0 %v590_v15 }
  0xc3   : > { %1433 = vmatprep.subr.mxu1 %v1584_v0  ;;  %1442 = vmatprep.subr.mxu0 %v1584_v0 }
  0xc4   : > { %1434 = vmatpush3.msra.mxu1 %v1836_v40  ;;  %1443 = vmatpush3.msra.mxu0 %v597_v28  ;;  %v993_v28 = vlaneseq }
  0xc5   : > { %1435 = vmatprep.subr.mxu1 %v1584_v0  ;;  %1444 = vmatprep.subr.mxu0 %v1584_v0 }
  0xc6   : > { %1436 = vmatpush3.msra.mxu1 %v518_v59  ;;  %1437 = vmatprep.mubr.msk.f32.mxu1 %vm1585_vm0, %v1584_v0  ;;  %v994_v30 = vshrl.u32 %v993_v28, 7 }
  0xc7   : > { %1445 = vmatpush3.msra.mxu0 %v604_v43  ;;  %1438 = vmatmul.mubr.f32.vlgmr.msra.gmra.mxu1 %v555_v55 }
  0xc8   : > { %1446 = vmatprep.subr.mxu0 %v1584_v0  ;;  %1451 = vmatprep.subr.mxu1 %v1584_v0  ;;  %v995_v31 = vsub.s32 %v992_v29, %v994_v30 }
  0xc9   : > { %1447 = vmatpush3.msra.mxu0 %v611_v61  ;;  %1448 = vmatprep.mubr.msk.f32.mxu0 %vm1585_vm0, %v1584_v0 }
  0xca   : > { %1452 = vmatpush3.msra.mxu1 %v1729_v12  ;;  %1449 = vmatmul.mubr.f32.vlgmr.msra.gmra.mxu0 %v1861_v50 }
  0xcb   : > { %1453 = vmatprep.subr.mxu1 %v1584_v0  ;;  %1459 = vmatprep.mubr.msk.f32.mxu1 %vm1585_vm0, %v1584_v0 }
  0xcc   : > { %1454 = vmatpush3.msra.mxu1 %v1788_v25 }
  0xcd   : > { %1455 = vmatprep.subr.mxu1 %v1584_v0 }
  0xce   : > { %1456 = vmatpush3.msra.mxu1 %v1836_v40 }
  0xcf   : > { %1457 = vmatprep.subr.mxu1 %v1584_v0  ;;  %v1289_v0 = vld [vmem:[%s1922_s3] ss:$0 sm:$0xff] }
  0xd0   : > { %1458 = vmatpush3.msra.mxu1 %v518_v59 }
  0xd1   : > { %1460 = vmatmul.mubr.f32.vlgmr.msra.gmra.mxu1 %v1861_v50 }
 0x177   : > { %v559_v1 = vpop.f32.mrf.mxu0 }
 0x179   : > { %v1406_v2 = vpop.f32.mrf.mxu0 }
 0x17f   : > { %v650_v3 = vpop.f32.mrf.mxu1 }
 0x180   : > { %v730_v4 = vpop.f32.mrf.mxu0  ;;  %v651_v7 = vadd.f32 %v650_v3, %v559_v1 }
 0x181   : > { %v1417_v5 = vpop.f32.mrf.mxu1 }
 0x182   : > { %v1428_v6 = vpop.f32.mrf.mxu0  ;;  %v731_v10 = vadd.f32 %v730_v4, %v651_v7 }
 0x187   : > { %v807_v8 = vpop.f32.mrf.mxu1 }
 0x188   : > { %v808_v12 = vadd.f32 %v807_v8, %v731_v10 }
 0x189   : > { %v1439_v9 = vpop.f32.mrf.mxu1 }
 0x18a   : > { %v890_v11 = vpop.f32.mrf.mxu0 }
 0x18b   : > { %v891_v14 = vadd.f32 %v890_v11, %v808_v12 }
 0x18c   : > { %v1450_v13 = vpop.f32.mrf.mxu0 }
 0x191   : > { %v965_v15 = vpop.f32.mrf.mxu1 }
 0x192   : > { %v966_v16 = vadd.f32 %v965_v15, %v891_v14 }
 0x193   : > { %v1461_v17 = vpop.f32.mrf.mxu1 }
 0x194   : > { %v976_v18 = vadd.f32 %v1289_v0, %v966_v16 }
 0x196   : > { %v978_v19 = vsel %vm977_vm2, %v976_v18, -inf }
 0x197   : > { %979 = vmax.xlane.f32.xlu0 %v978_v19 }
 0x220   : > { %v980_v20 = vpop.xlane.xlu0 %979 }
 0x221   : > { %v981_v21 = vsub.f32 %v976_v18, %v980_v20 }
 0x223   : > { %v982_v22 = vmul.f32 1.442695, %v981_v21 }
 0x225   : > { %1497 = vpow2.f32 %v982_v22 }
 0x232   : > { %v1498_v23 = vpop.eup %1497 }
 0x233   : > { %v984_v24 = vsel %vm977_vm2, %v1498_v23, 0.0 }
 0x234   : > { %985 = vadd.xlane.f32.xlu0 %v984_v24 }
 0x2bd   : > { %v986_v25 = vpop.xlane.xlu0 %985 }
 0x2be   : > { %1499 = vrcp.f32 %v986_v25 }
 0x2cb   : > { %v1500_v32 = vpop.eup %1499 }
 0x2cc   : > { %v988_v33 = vmul.f32 %v1500_v32, %v1498_v23 }
 0x2ce   : > { %v996_v34 = vrot.slane %v988_v33, %v995_v31 }
 0x2d0   : > { %v997_v35 = vcombine.high %v996_v34, %v996_v34  ;;  %v1004_v36 = vrot.slane %v996_v34, %v995_v31 }
 0x2d2   : > { %v1011_v37 = vrot.slane %v997_v35, %v995_v31  ;;  %v1012_v38 = vcombine.high %v1004_v36, %v1004_v36  ;;  %1019 = vst.msk [vmem:[%s181_s23] sm:$0x1] %vm1018_vm3, %v1004_v36 }
 0x2d4   : > { %v1013_v39 = vcombine.high %v1011_v37, %v1011_v37  ;;  %1020 = vst.msk [vmem:[%s181_s23 + $0x1] sm:$0x1] %vm1018_vm3, %v1011_v37  ;;  %1021 = vst.msk [vmem:[%s181_s23 + $0x2] sm:$0x1] %vm1018_vm3, %v1012_v38 }
 0x2d6   : > { %1022 = vst.msk [vmem:[%s181_s23 + $0x3] sm:$0x1] %vm1018_vm3, %v1013_v39 }
 0x2d7 PF: > { %s20_s18 = sadd.s32 1, %s1577_s18  }
 0x2d8   : > { %p17_p9 = scmp.ge.s32.totalorder %s20_s18, 4  }
 0x2da   :  { %19 = sbr.rel (!%p17_p9) target bundleno = 7 (0x7), region = 100 }
 0x2df   :  { %1043 = vsyncpa [#allocation6], 1 }
 0x2e0   :  { %1045 = vsyncpa [#allocation6 + $0x1], 1 }
 0x2e1   :  { %1046 = vsyncpa [#allocation8], 1 }

</bundles_post_ra>
